<compile_context>
chip_gen: v6e
topology: v6e:2x2x1
jax: 0.10.0
libtpu: 0.0.40
codegen_flags: <defaults>
</compile_context>

<pallas_src>
import functools

import jax
import jax.numpy as jnp
from jax.experimental import pallas as pl
from jax.experimental.pallas import tpu as pltpu

BN_EPS = 1e-5


def _round_up(x, m):
    return (x + m - 1) // m * m


def _stacked_window(xw_ref, *, K, TL, stride):
    """Build the (K*C_in_p, TL) im2col operand from one (1,1,C_in_p,WLOAD) window."""
    if stride == 1:
        parts = [xw_ref[0, 0, :, pl.ds(k, TL)] for k in range(K)]
    else:
        xwin = xw_ref[0, 0]
        cin = xwin.shape[0]
        # TODO(synk): stride > 1 pays K strided lane slices (XLU-heavy); a
        # wrapper-side phase de-interleave would make these contiguous.
        parts = [jax.lax.slice(xwin, (0, k), (cin, k + (TL - 1) * stride + 1),
                               (1, stride)) for k in range(K)]
    return jnp.concatenate(parts, axis=0)


def _conv_stats_kernel(xw_ref, w_ref, st_ref, *, K, TL, stride, num_j, rem):
    """Pass 1: conv for one (batch, C_out-tile, L-tile) -> partial BN stats.

    xw_ref : (1, 1, C_in_p, WLOAD)  bf16 input window
    w_ref  : (CT, K*C_in_p)         bf16 stacked weights
    st_ref : (1, 1, 1, CT, 2)       f32  [:, 0]=sum, [:, 1]=sum of squares
    """
    xs = _stacked_window(xw_ref, K=K, TL=TL, stride=stride)
    y = jnp.dot(w_ref[...], xs, preferred_element_type=jnp.float32)  # (CT, TL)

    def emit(yv):
        s1 = jnp.sum(yv, axis=1, keepdims=True)
        s2 = jnp.sum(yv * yv, axis=1, keepdims=True)
        st_ref[0, 0, 0] = jnp.concatenate([s1, s2], axis=1)          # (CT, 2)

    if rem == 0:
        emit(y)                                   # no length padding anywhere
    else:
        @pl.when(pl.program_id(2) == num_j - 1)   # only last tile is ragged
        def _():
            col = jax.lax.broadcasted_iota(jnp.int32, y.shape, 1)
            emit(jnp.where(col < rem, y, 0.0))

        @pl.when(pl.program_id(2) != num_j - 1)
        def _():
            emit(y)


def _conv_bn_relu_kernel(xw_ref, w_ref, sc_ref, sh_ref, o_ref, *, K, TL, stride):
    """Pass 2: recompute conv, apply per-channel scale/shift, ReLU.

    sc_ref/sh_ref : (CT, 1) f32 precomputed BN scale / shift
    o_ref         : (1, CT, TL) f32 output tile
    """
    xs = _stacked_window(xw_ref, K=K, TL=TL, stride=stride)
    y = jnp.dot(w_ref[...], xs, preferred_element_type=jnp.float32)  # (CT, TL)
    o_ref[0] = jnp.maximum(y * sc_ref[...] + sh_ref[...], 0.0).astype(o_ref.dtype)


@functools.partial(jax.jit, static_argnames=("stride", "padding"))
def conv_block_forward(x, weight, bias, gamma, beta, *, stride=1, padding=1):
    """x: (N, C_in, L); weight: (C_out, C_in, K); bias/gamma/beta: (C_out,).

    Returns (N, C_out, L_out) float32 = ReLU(BatchNorm1d(Conv1d(x))) with
    BatchNorm in training mode (biased batch stats over (N, L) per channel).
    Note: the conv bias cancels exactly under training-mode BatchNorm, so the
    kernels never touch it.
    """
    del bias  # mathematically cancelled by the batch-mean subtraction
    N, C_in, L = x.shape
    C_out, _, K = weight.shape
    L_out = (L + 2 * padding - K) // stride + 1

    # ---- TPU-friendly padding / tiling ------------------------------------
    C_in_p = _round_up(C_in, 16)          # bf16 sublane packing
    C_out_p = _round_up(C_out, 16)
    CT = C_out_p if C_out_p <= 128 else 128       # C_out tile
    C_out_p = _round_up(C_out_p, CT)
    num_c = C_out_p // CT
    # Length tile: as large as an ~128 KiB f32 accumulator budget allows.
    tl_cap = max(256, (32768 // CT) // 128 * 128)
    TL = min(tl_cap, _round_up(L_out, 128))
    L_out_p = _round_up(L_out, TL)
    num_j = L_out_p // TL
    rem = L_out % TL                                # valid cols in last tile
    WLOAD = _round_up((TL - 1) * stride + K, 128)   # aligned input window
    L_xp = max((num_j - 1) * TL * stride + WLOAD, L + 2 * padding)

    # ---- plain-JAX glue: zero-pad, window the input, stack the weights ----
    xp = jnp.pad(x.astype(jnp.float32),
                 ((0, 0), (0, C_in_p - C_in),
                  (padding, L_xp - padding - L))).astype(jnp.bfloat16)
    starts = jnp.arange(num_j) * (TL * stride)
    idx = starts[:, None] + jnp.arange(WLOAD)[None, :]            # (num_j, WLOAD)
    x_win = jnp.transpose(xp[:, :, idx], (0, 2, 1, 3))  # (N, num_j, C_in_p, WLOAD)

    w_p = jnp.pad(weight, ((0, C_out_p - C_out), (0, C_in_p - C_in), (0, 0)))
    w_st = jnp.transpose(w_p, (0, 2, 1)).reshape(
        C_out_p, K * C_in_p).astype(jnp.bfloat16)                 # (C_out_p, K*C_in_p)
    g_p = jnp.pad(gamma, (0, C_out_p - C_out)).astype(jnp.float32).reshape(C_out_p, 1)
    be_p = jnp.pad(beta, (0, C_out_p - C_out)).astype(jnp.float32).reshape(C_out_p, 1)

    grid = (N, num_c, num_j)
    vmem_est = (2 * C_in_p * WLOAD * 2            # x window (double-buffered)
                + 2 * CT * K * C_in_p * 2         # stacked weights
                + 2 * CT * TL * 4                 # output tile
                + K * C_in_p * TL * 2 + CT * TL * 4   # in-kernel temporaries
                + 16 * CT * 4)                    # stats / scale / shift
    params = pltpu.CompilerParams(
        dimension_semantics=("parallel", "parallel", "parallel"),
        vmem_limit_bytes=int(min(32 * 1024 * 1024,
                                 max(16 * 1024 * 1024, 4 * vmem_est))))

    # ---- pass 1: conv -> per-tile partial BN stats (no y written) ---------
    stats_kernel = functools.partial(
        _conv_stats_kernel, K=K, TL=TL, stride=stride, num_j=num_j, rem=rem)
    st = pl.pallas_call(
        stats_kernel,
        out_shape=jax.ShapeDtypeStruct((N, num_c, num_j, CT, 2), jnp.float32),
        grid=grid,
        in_specs=[
            pl.BlockSpec((1, 1, C_in_p, WLOAD), lambda n, c, j: (n, j, 0, 0)),
            pl.BlockSpec((CT, K * C_in_p), lambda n, c, j: (c, 0)),
        ],
        out_specs=pl.BlockSpec((1, 1, 1, CT, 2), lambda n, c, j: (n, c, j, 0, 0)),
        compiler_params=params,
    )(x_win, w_st)

    # ---- tiny global reduction + BN affine folding (plain JAX) ------------
    st = jnp.sum(st, axis=(0, 2)).reshape(C_out_p, 2)
    inv_count = 1.0 / float(N * L_out)
    mean = st[:, 0:1] * inv_count
    # TODO(synk): E[y^2]-mean^2 variance can lose precision for |mean|>>std.
    var = jnp.maximum(st[:, 1:2] * inv_count - mean * mean, 0.0)
    scale = g_p * jax.lax.rsqrt(var + BN_EPS)                     # (C_out_p, 1)
    shift = be_p - mean * scale

    # ---- pass 2: recompute conv, apply scale/shift + ReLU, write output ---
    bn_kernel = functools.partial(_conv_bn_relu_kernel, K=K, TL=TL, stride=stride)
    out_p = pl.pallas_call(
        bn_kernel,
        out_shape=jax.ShapeDtypeStruct((N, C_out_p, L_out_p), jnp.float32),
        grid=grid,
        in_specs=[
            pl.BlockSpec((1, 1, C_in_p, WLOAD), lambda n, c, j: (n, j, 0, 0)),
            pl.BlockSpec((CT, K * C_in_p), lambda n, c, j: (c, 0)),
            pl.BlockSpec((CT, 1), lambda n, c, j: (c, 0)),
            pl.BlockSpec((CT, 1), lambda n, c, j: (c, 0)),
        ],
        out_specs=pl.BlockSpec((1, CT, TL), lambda n, c, j: (n, c, j)),
        compiler_params=params,
    )(x_win, w_st, scale, shift)

    # Slice off channel / length padding; output is already (N, C_out, L_out).
    return out_p[:, :C_out, :L_out]


if __name__ == "__main__":
    # Small shapes consistent with Conv1d/BatchNorm1d over sequences.
    N, C_in, L = 2, 4, 16
    C_out, K = 8, 3
    stride, padding = 1, 1
    L_out = (L + 2 * padding - K) // stride + 1

    key = jax.random.PRNGKey(0)
    kx, kw, kb, kg, kbe = jax.random.split(key, 5)

    x = jax.random.normal(kx, (N, C_in, L), dtype=jnp.float32)
    weight = 0.1 * jax.random.normal(kw, (C_out, C_in, K), dtype=jnp.float32)
    bias = 0.1 * jax.random.normal(kb, (C_out,), dtype=jnp.float32)
    gamma = 1.0 + 0.05 * jax.random.normal(kg, (C_out,), dtype=jnp.float32)
    beta = 0.05 * jax.random.normal(kbe, (C_out,), dtype=jnp.float32)

    out = conv_block_forward(x, weight, bias, gamma, beta,
                             stride=stride, padding=padding)
    jax.block_until_ready(out)

    # Pure-JAX reference of the same math (conv operands in bf16 like the
    # kernel's MXU inputs; accumulation and BatchNorm entirely in f32).
    def ref_forward(x, weight, bias, gamma, beta):
        y = jax.lax.conv_general_dilated(
            x.astype(jnp.bfloat16), weight.astype(jnp.bfloat16),
            window_strides=(stride,), padding=[(padding, padding)],
            dimension_numbers=("NCH", "OIH", "NCH"),
            preferred_element_type=jnp.float32)
        y = y + bias[None, :, None]
        mean = jnp.mean(y, axis=(0, 2), keepdims=True)
        var = jnp.mean((y - mean) ** 2, axis=(0, 2), keepdims=True)
        y = (y - mean) * jax.lax.rsqrt(var + BN_EPS)
        y = y * gamma[None, :, None] + beta[None, :, None]
        return jnp.maximum(y, 0.0)

    ref = ref_forward(x, weight, bias, gamma, beta)
    assert out.shape == (N, C_out, L_out)
    assert bool(jnp.allclose(out, ref, atol=1e-3, rtol=1e-3)), (
        f"max abs err {float(jnp.max(jnp.abs(out - ref)))}")
    # TODO(synk): BatchNorm1d running-mean/var buffer updates (module state)
    # are not part of the forward output and are not computed here.
    print("KERNEL_OK")
</pallas_src>

<mosaic_0001>
module attributes {stable_mosaic.version = 11 : i64} {
  func.func @_conv_stats_kernel(%arg0: i32, %arg1: i32, %arg2: i32, %arg3: memref<1x1x16x256xbf16, #tpu.memory_space<vmem>>, %arg4: memref<16x48xbf16, #tpu.memory_space<vmem>>, %arg5: memref<1x1x1x16x2xf32, #tpu.memory_space<vmem>>) attributes {dimension_semantics = [#tpu.dimension_semantics<parallel>, #tpu.dimension_semantics<parallel>, #tpu.dimension_semantics<parallel>], iteration_bounds = array<i64: 2, 1, 1>, scalar_prefetch = 0 : i64, scratch_operands = 0 : i64, tpu.core_type = #tpu.core_type<tc>, window_params = [{transform_indices = @transform_0, window_bounds = array<i64: 1, 1, 16, 256>}, {transform_indices = @transform_1, window_bounds = array<i64: 16, 48>}, {transform_indices = @transform_2, window_bounds = array<i64: 1, 1, 1, 16, 2>}]} {
    %c0 = arith.constant 0 : index
    %c0_0 = arith.constant 0 : index
    %c0_1 = arith.constant 0 : index
    %c0_2 = arith.constant 0 : index
    %0 = vector.load %arg3[%c0, %c0_0, %c0_1, %c0_2] : memref<1x1x16x256xbf16, #tpu.memory_space<vmem>>, vector<1x1x16x128xbf16>
    %1 = vector.shape_cast %0 : vector<1x1x16x128xbf16> to vector<16x128xbf16>
    %c0_3 = arith.constant 0 : index
    %c0_4 = arith.constant 0 : index
    %c0_5 = arith.constant 0 : index
    %c1 = arith.constant 1 : index
    %2 = vector.load %arg3[%c0_3, %c0_4, %c0_5, %c1] : memref<1x1x16x256xbf16, #tpu.memory_space<vmem>>, vector<1x1x16x128xbf16>
    %3 = vector.shape_cast %2 : vector<1x1x16x128xbf16> to vector<16x128xbf16>
    %c0_6 = arith.constant 0 : index
    %c0_7 = arith.constant 0 : index
    %c0_8 = arith.constant 0 : index
    %c2 = arith.constant 2 : index
    %4 = vector.load %arg3[%c0_6, %c0_7, %c0_8, %c2] : memref<1x1x16x256xbf16, #tpu.memory_space<vmem>>, vector<1x1x16x128xbf16>
    %5 = vector.shape_cast %4 : vector<1x1x16x128xbf16> to vector<16x128xbf16>
    %6 = tpu.concatenate %1, %3, %5 in 0 : vector<16x128xbf16>, vector<16x128xbf16>, vector<16x128xbf16> -> vector<48x128xbf16>
    %c0_9 = arith.constant 0 : index
    %c0_10 = arith.constant 0 : index
    %7 = vector.load %arg4[%c0_9, %c0_10] : memref<16x48xbf16, #tpu.memory_space<vmem>>, vector<16x48xbf16>
    %cst = arith.constant dense<0.000000e+00> : vector<16x128xf32>
    %8 = tpu.matmul %7, %6, %cst {dimension_numbers = #tpu.dot_dimension_numbers<[1], [0], [0], [1], [0, 0, 1, 1], [], []>} : vector<16x48xbf16>, vector<48x128xbf16>, vector<16x128xf32> -> vector<16x128xf32>
    %c0_i32 = arith.constant 0 : i32
    %9 = arith.cmpi eq, %arg2, %c0_i32 : i32
    %10 = arith.extui %9 : i1 to i32
    %c0_i32_11 = arith.constant 0 : i32
    %11 = arith.cmpi ne, %10, %c0_i32_11 : i32
    scf.if %11 {
      %15 = tpu.iota {dimensions = array<i32: 1>} : vector<16x128xi32>
      %c16_i32 = arith.constant 16 : i32
      %16 = vector.broadcast %c16_i32 : i32 to vector<16x128xi32>
      %17 = arith.cmpi slt, %15, %16 : vector<16x128xi32>
      %cst_14 = arith.constant 0.000000e+00 : f32
      %18 = vector.broadcast %cst_14 : f32 to vector<16x128xf32>
      %19 = arith.select %17, %8, %18 : vector<16x128xi1>, vector<16x128xf32>
      %cst_15 = arith.constant dense<0.000000e+00> : vector<16xf32>
      %20 = vector.multi_reduction <add>, %19, %cst_15 [1] : vector<16x128xf32> to vector<16xf32>
      %21 = vector.shape_cast %20 : vector<16xf32> to vector<16x1xf32>
      %22 = arith.mulf %19, %19 : vector<16x128xf32>
      %cst_16 = arith.constant dense<0.000000e+00> : vector<16xf32>
      %23 = vector.multi_reduction <add>, %22, %cst_16 [1] : vector<16x128xf32> to vector<16xf32>
      %24 = vector.shape_cast %23 : vector<16xf32> to vector<16x1xf32>
      %25 = tpu.concatenate %21, %24 in 1 : vector<16x1xf32>, vector<16x1xf32> -> vector<16x2xf32>
      %c0_17 = arith.constant 0 : index
      %c0_18 = arith.constant 0 : index
      %c0_19 = arith.constant 0 : index
      %c0_20 = arith.constant 0 : index
      %c0_21 = arith.constant 0 : index
      %26 = vector.load %arg5[%c0_17, %c0_18, %c0_19, %c0_20, %c0_21] : memref<1x1x1x16x2xf32, #tpu.memory_space<vmem>>, vector<1x1x1x16x2xf32>
      %27 = vector.shape_cast %26 : vector<1x1x1x16x2xf32> to vector<16x2xf32>
      %28 = vector.shape_cast %25 : vector<16x2xf32> to vector<1x1x1x16x2xf32>
      tpu.vector_store %arg5[%c0_17, %c0_18, %c0_19, %c0_20, %c0_21], %28 {strides = array<i32>} : memref<1x1x1x16x2xf32, #tpu.memory_space<vmem>>, vector<1x1x1x16x2xf32>,
    } else {
    }
    %c0_i32_12 = arith.constant 0 : i32
    %12 = arith.cmpi ne, %arg2, %c0_i32_12 : i32
    %13 = arith.extui %12 : i1 to i32
    %c0_i32_13 = arith.constant 0 : i32
    %14 = arith.cmpi ne, %13, %c0_i32_13 : i32
    scf.if %14 {
      %cst_14 = arith.constant dense<0.000000e+00> : vector<16xf32>
      %15 = vector.multi_reduction <add>, %8, %cst_14 [1] : vector<16x128xf32> to vector<16xf32>
      %16 = vector.shape_cast %15 : vector<16xf32> to vector<16x1xf32>
      %17 = arith.mulf %8, %8 : vector<16x128xf32>
      %cst_15 = arith.constant dense<0.000000e+00> : vector<16xf32>
      %18 = vector.multi_reduction <add>, %17, %cst_15 [1] : vector<16x128xf32> to vector<16xf32>
      %19 = vector.shape_cast %18 : vector<16xf32> to vector<16x1xf32>
      %20 = tpu.concatenate %16, %19 in 1 : vector<16x1xf32>, vector<16x1xf32> -> vector<16x2xf32>
      %c0_16 = arith.constant 0 : index
      %c0_17 = arith.constant 0 : index
      %c0_18 = arith.constant 0 : index
      %c0_19 = arith.constant 0 : index
      %c0_20 = arith.constant 0 : index
      %21 = vector.load %arg5[%c0_16, %c0_17, %c0_18, %c0_19, %c0_20] : memref<1x1x1x16x2xf32, #tpu.memory_space<vmem>>, vector<1x1x1x16x2xf32>
      %22 = vector.shape_cast %21 : vector<1x1x1x16x2xf32> to vector<16x2xf32>
      %23 = vector.shape_cast %20 : vector<16x2xf32> to vector<1x1x1x16x2xf32>
      tpu.vector_store %arg5[%c0_16, %c0_17, %c0_18, %c0_19, %c0_20], %23 {strides = array<i32>} : memref<1x1x1x16x2xf32, #tpu.memory_space<vmem>>, vector<1x1x1x16x2xf32>,
    } else {
    }
    return
  }
  func.func @transform_0(%arg0: i32, %arg1: i32, %arg2: i32) -> (i32, i32, i32, i32) {
    %c0_i32 = arith.constant 0 : i32
    %c0_i32_0 = arith.constant 0 : i32
    %c0_i32_1 = arith.constant 0 : i32
    return %arg0, %arg2, %c0_i32, %c0_i32_0 : i32, i32, i32, i32
  }
  func.func @transform_1(%arg0: i32, %arg1: i32, %arg2: i32) -> (i32, i32) {
    %c0_i32 = arith.constant 0 : i32
    %c0_i32_0 = arith.constant 0 : i32
    return %arg1, %c0_i32 : i32, i32
  }
  func.func @transform_2(%arg0: i32, %arg1: i32, %arg2: i32) -> (i32, i32, i32, i32, i32) {
    %c0_i32 = arith.constant 0 : i32
    %c0_i32_0 = arith.constant 0 : i32
    %c0_i32_1 = arith.constant 0 : i32
    return %arg0, %arg1, %arg2, %c0_i32, %c0_i32_0 : i32, i32, i32, i32, i32
  }
}

module attributes {stable_mosaic.version = 11 : i64} {
  func.func @_conv_bn_relu_kernel(%arg0: i32, %arg1: i32, %arg2: i32, %arg3: memref<1x1x16x256xbf16, #tpu.memory_space<vmem>>, %arg4: memref<16x48xbf16, #tpu.memory_space<vmem>>, %arg5: memref<16x1xf32, #tpu.memory_space<vmem>>, %arg6: memref<16x1xf32, #tpu.memory_space<vmem>>, %arg7: memref<1x16x128xf32, #tpu.memory_space<vmem>>) attributes {dimension_semantics = [#tpu.dimension_semantics<parallel>, #tpu.dimension_semantics<parallel>, #tpu.dimension_semantics<parallel>], iteration_bounds = array<i64: 2, 1, 1>, scalar_prefetch = 0 : i64, scratch_operands = 0 : i64, tpu.core_type = #tpu.core_type<tc>, window_params = [{transform_indices = @transform_0, window_bounds = array<i64: 1, 1, 16, 256>}, {transform_indices = @transform_1, window_bounds = array<i64: 16, 48>}, {transform_indices = @transform_2, window_bounds = array<i64: 16, 1>}, {transform_indices = @transform_3, window_bounds = array<i64: 16, 1>}, {transform_indices = @transform_4, window_bounds = array<i64: 1, 16, 128>}]} {
    %c0 = arith.constant 0 : index
    %c0_0 = arith.constant 0 : index
    %c0_1 = arith.constant 0 : index
    %c0_2 = arith.constant 0 : index
    %0 = vector.load %arg3[%c0, %c0_0, %c0_1, %c0_2] : memref<1x1x16x256xbf16, #tpu.memory_space<vmem>>, vector<1x1x16x128xbf16>
    %1 = vector.shape_cast %0 : vector<1x1x16x128xbf16> to vector<16x128xbf16>
    %c0_3 = arith.constant 0 : index
    %c0_4 = arith.constant 0 : index
    %c0_5 = arith.constant 0 : index
    %c1 = arith.constant 1 : index
    %2 = vector.load %arg3[%c0_3, %c0_4, %c0_5, %c1] : memref<1x1x16x256xbf16, #tpu.memory_space<vmem>>, vector<1x1x16x128xbf16>
    %3 = vector.shape_cast %2 : vector<1x1x16x128xbf16> to vector<16x128xbf16>
    %c0_6 = arith.constant 0 : index
    %c0_7 = arith.constant 0 : index
    %c0_8 = arith.constant 0 : index
    %c2 = arith.constant 2 : index
    %4 = vector.load %arg3[%c0_6, %c0_7, %c0_8, %c2] : memref<1x1x16x256xbf16, #tpu.memory_space<vmem>>, vector<1x1x16x128xbf16>
    %5 = vector.shape_cast %4 : vector<1x1x16x128xbf16> to vector<16x128xbf16>
    %6 = tpu.concatenate %1, %3, %5 in 0 : vector<16x128xbf16>, vector<16x128xbf16>, vector<16x128xbf16> -> vector<48x128xbf16>
    %c0_9 = arith.constant 0 : index
    %c0_10 = arith.constant 0 : index
    %7 = vector.load %arg4[%c0_9, %c0_10] : memref<16x48xbf16, #tpu.memory_space<vmem>>, vector<16x48xbf16>
    %cst = arith.constant dense<0.000000e+00> : vector<16x128xf32>
    %8 = tpu.matmul %7, %6, %cst {dimension_numbers = #tpu.dot_dimension_numbers<[1], [0], [0], [1], [0, 0, 1, 1], [], []>} : vector<16x48xbf16>, vector<48x128xbf16>, vector<16x128xf32> -> vector<16x128xf32>
    %c0_11 = arith.constant 0 : index
    %c0_12 = arith.constant 0 : index
    %9 = vector.load %arg5[%c0_11, %c0_12] : memref<16x1xf32, #tpu.memory_space<vmem>>, vector<16x1xf32>
    %10 = vector.broadcast %9 : vector<16x1xf32> to vector<16x128xf32>
    %11 = arith.mulf %8, %10 : vector<16x128xf32>
    %c0_13 = arith.constant 0 : index
    %c0_14 = arith.constant 0 : index
    %12 = vector.load %arg6[%c0_13, %c0_14] : memref<16x1xf32, #tpu.memory_space<vmem>>, vector<16x1xf32>
    %13 = vector.broadcast %12 : vector<16x1xf32> to vector<16x128xf32>
    %14 = arith.addf %11, %13 : vector<16x128xf32>
    %cst_15 = arith.constant 0.000000e+00 : f32
    %15 = vector.broadcast %cst_15 : f32 to vector<16x128xf32>
    %16 = arith.maximumf %14, %15 : vector<16x128xf32>
    %c0_16 = arith.constant 0 : index
    %c0_17 = arith.constant 0 : index
    %c0_18 = arith.constant 0 : index
    %17 = vector.load %arg7[%c0_16, %c0_17, %c0_18] : memref<1x16x128xf32, #tpu.memory_space<vmem>>, vector<1x16x128xf32>
    %18 = vector.shape_cast %17 : vector<1x16x128xf32> to vector<16x128xf32>
    %19 = vector.shape_cast %16 : vector<16x128xf32> to vector<1x16x128xf32>
    tpu.vector_store %arg7[%c0_16, %c0_17, %c0_18], %19 {strides = array<i32>} : memref<1x16x128xf32, #tpu.memory_space<vmem>>, vector<1x16x128xf32>,
    return
  }
  func.func @transform_0(%arg0: i32, %arg1: i32, %arg2: i32) -> (i32, i32, i32, i32) {
    %c0_i32 = arith.constant 0 : i32
    %c0_i32_0 = arith.constant 0 : i32
    %c0_i32_1 = arith.constant 0 : i32
    return %arg0, %arg2, %c0_i32, %c0_i32_0 : i32, i32, i32, i32
  }
  func.func @transform_1(%arg0: i32, %arg1: i32, %arg2: i32) -> (i32, i32) {
    %c0_i32 = arith.constant 0 : i32
    %c0_i32_0 = arith.constant 0 : i32
    return %arg1, %c0_i32 : i32, i32
  }
  func.func @transform_2(%arg0: i32, %arg1: i32, %arg2: i32) -> (i32, i32) {
    %c0_i32 = arith.constant 0 : i32
    %c0_i32_0 = arith.constant 0 : i32
    return %arg1, %c0_i32 : i32, i32
  }
  func.func @transform_3(%arg0: i32, %arg1: i32, %arg2: i32) -> (i32, i32) {
    %c0_i32 = arith.constant 0 : i32
    %c0_i32_0 = arith.constant 0 : i32
    return %arg1, %c0_i32 : i32, i32
  }
  func.func @transform_4(%arg0: i32, %arg1: i32, %arg2: i32) -> (i32, i32, i32) {
    %c0_i32 = arith.constant 0 : i32
    return %arg0, %arg1, %arg2 : i32, i32, i32
  }
}

</mosaic_0001>

<bundles_post_ra>
// kernel: conv_block_forward.2
= control target key start
LH: loop header
LB: loop body
LE: loop exit
PB: predicated region body
PF: predicated region fallthrough
CT: control target
= control target key end

     0   :  { %s585_s9 = smov 0   ;;  %s587_s10 = smov 0   ;;  %s628_s0 = inlined_call_operand.vmem [shape: bf16[2,1,16,256], index: 0, kind: input, shape index: {}]   ;;  %s629_s1 = inlined_call_operand.vmem [shape: bf16[16,48], index: 1, kind: input, shape index: {}]   ;;  %s630_s2 = inlined_call_operand.vmem [shape: f32[2,1,1,16,2], index: 2, kind: output, shape index: {}]  }
   0x1   :  { %s589_s11 = smov 0  }
   0x2 LB: > { %s31_s12 = sadd.s32 1, %s560_s10  ;;  %p481_p0 = scmp.ge.s32.totalorder %s564_s11, 1  ;;  %s564_s11 = sphi %s589_s11, %s12_s11   ;;  %s560_s10 = sphi %s587_s10, %s632_s10   ;;  %s556_s9 = sphi %s585_s9, %s631_s9  }
   0x3   : > { %p33_p1 = scmp.ge.s32.totalorder %s31_s12, 2  ;;  %p152_p2 = scmp.lt.s32.totalorder %s564_s11, 3 }
   0x5   : > { %s634_s12 = smov (%p33_p1, %s31_s12), 0  ;;  %p153_p3 = pnand %p481_p0, %p152_p2 }
   0x6   : > { %p191_p4 = scmp.lt.s32.totalorder (!%p153_p3), %s556_s9, 1  ;;  %s567_s17 = smov (!%p153_p3), 127  }
   0x7   : > { %156 = sbr.rel (%p153_p3) target bundleno = 489 (0x1e9), region = 28  ;;  %s568_s18 = smov (!%p153_p3), 126  }
   0xc   : > { %v566_v0 = vmov 0.0   ;;  %s636_s9 = smov (!%p191_p4, %s556_s9), 1  ;;  %vm569_vm0 = vmmov 0   ;;  %vm249_vm1 = vcmask 1031168   ;;  %vm242_vm2 = vcmask 1039360   ;;  %v541_v10 = vld [vmem:[%s629_s1] sm:$0xff]  }
   0xd   : > { %499 = vmatprep.subr.bf16.mxu0 %v566_v0  ;;  %s493_s13 = sshll.u32 %s636_s9, 4  ;;  %505 = vmatprep.mubr.msk.bf16.mxu0 %vm569_vm0, %v566_v0  ;;  %vm259_vm3 = vcmask 392192   ;;  %v308_v11 = vlaneseq  ;;  %vm323_vm5 = vcmask 7168   ;;  %vm326_vm6 = vcmask 15360  }
   0xe   : > { %s199_s16 = scalar_lea.vmem %s628_s0, %s493_s13  ;;  %s218_s23 = scalar_lea.vmem %s630_s2, %s493_s13 }
   0xf   : > { %v537_v1 = vld [vmem:[%s199_s16] ss:$8 sps:$4 sm:$0xff]   ;;  %v539_v2 = vld [vmem:[%s199_s16 + $0x4] ss:$8 sps:$4 sm:$0xff]   ;;  %v309_v12 = vand.u32 127, %v308_v11 }
  0x10   : > { %238 = vrot.lane.b32.xlu1 %v537_v1, %s567_s17  ;;  %245 = vrot.lane.b32.xlu0 %v537_v1, %s568_s18  ;;  %v540_v9 = vld [vmem:[%s199_s16] ss:$8 sps:$4 sm:$0xff]  }
  0x11   : > { %vm310_vm4 = vcmp.lt.s32.totalorder %v309_v12, 16 }
  0x14   : > { %240 = vrot.lane.b32.xlu1 %v539_v2, %s567_s17  ;;  %247 = vrot.lane.b32.xlu0 %v539_v2, %s568_s18 }
  0x82   : > { %v239_v3 = vpop.permute.xlu1 %238  ;;  %v246_v4 = vpop.permute.xlu0 %245 }
  0x86   : > { %v248_v5 = vpop.permute.xlu0 %247  ;;  %v241_v7 = vpop.permute.xlu1 %240 }
  0x87   : > { %v250_v6 = vsel %vm249_vm1, %v246_v4, %v248_v5  ;;  %v243_v8 = vsel %vm242_vm2, %v239_v3, %v241_v7 }
  0x88   : > { %500 = vmatpush3.bf16.msra.mxu0 %v250_v6 }
  0x89   : > { %501 = vmatprep.subr.bf16.mxu0 %v566_v0 }
  0x8c   : > { %502 = vmatpush3.bf16.msra.mxu0 %v243_v8 }
  0x8d   : > { %503 = vmatprep.subr.bf16.mxu0 %v566_v0 }
  0x90   : > { %504 = vmatpush3.bf16.msra.mxu0 %v540_v9 }
  0x93   : > { %506 = vmatmul.mubr.msk.bf16.vlgmr.msra.gmra.mxu0 %vm259_vm3, %v541_v10 }
 0x153   : > { %v297_v13 = vpop.f32.mrf.mxu0 }
 0x154   : > { %v311_v14 = vsel %vm310_vm4, %v297_v13, 0.0 }
 0x155   : > { %313 = vadd.xlane.f32.xlu0 %v311_v14  ;;  %v507_v15 = vpop.f32.mrf.mxu0  ;;  %v317_v17 = vmul.f32 %v311_v14, %v311_v14 }
 0x157   : > { %v300_v16 = vpop.f32.mrf.mxu0 }
 0x158   : > { %v312_v18 = vsel %vm310_vm4, %v300_v16, 0.0 }
 0x159   : > { %319 = vadd.xlane.f32.xlu0 %v317_v17  ;;  %315 = vadd.xlane.f32.xlu1 %v312_v18  ;;  %v508_v19 = vpop.f32.mrf.mxu0  ;;  %v318_v20 = vmul.f32 %v312_v18, %v312_v18 }
 0x15d   : > { %321 = vadd.xlane.f32.xlu0 %v318_v20 }
 0x1de   : > { %v314_v21 = vpop.xlane.xlu0 %313 }
 0x1e2   : > { %v320_v22 = vpop.xlane.xlu0 %319  ;;  %v316_v24 = vpop.xlane.xlu1 %315 }
 0x1e3   : > { %v324_v23 = vsel %vm323_vm5, %v314_v21, %v320_v22 }
 0x1e4   : > { %327 = vst.msk [vmem:[%s218_s23] sm:$0xff] %vm326_vm6, %v324_v23 }
 0x1e6   : > { %v322_v25 = vpop.xlane.xlu0 %321 }
 0x1e7   : > { %v325_v26 = vsel %vm323_vm5, %v316_v24, %v322_v25 }
 0x1e8   : > { %328 = vst.msk [vmem:[%s218_s23 + $0x8] sm:$0xff] %vm326_vm6, %v325_v26 }
 0x1e9 PF: > { %s12_s11 = sadd.s32 1, %s564_s11   ;;  %s631_s9 = smov %s560_s10 }
 0x1ea   : > { %p9_p5 = scmp.ge.s32.totalorder %s12_s11, 4   ;;  %s632_s10 = smov %s634_s12 }
 0x1ec   :  { %11 = sbr.rel (!%p9_p5) target bundleno = 2 (0x2), region = 69 }

// kernel: conv_block_forward.3
= control target key start
LH: loop header
LB: loop body
LE: loop exit
PB: predicated region body
PF: predicated region fallthrough
CT: control target
= control target key end

     0   :  { %s706_s15 = smov 0   ;;  %s708_s16 = smov 0   ;;  %s766_s0 = inlined_call_operand.vmem [shape: bf16[2,1,16,256], index: 0, kind: input, shape index: {}]   ;;  %s767_s1 = inlined_call_operand.vmem [shape: bf16[16,48], index: 1, kind: input, shape index: {}]   ;;  %s768_s2 = inlined_call_operand.vmem [shape: f32[16,1], index: 2, kind: input, shape index: {}]   ;;  %s769_s3 = inlined_call_operand.vmem [shape: f32[16,1], index: 3, kind: input, shape index: {}]   ;;  %s770_s4 = inlined_call_operand.vmem [shape: f32[2,16,128], index: 4, kind: output, shape index: {}]  }
   0x1   :  { %s710_s17 = smov 0  }
   0x2 LB: > { %s33_s18 = sadd.s32 1, %s670_s16  ;;  %p588_p0 = scmp.ge.s32.totalorder %s674_s17, 1  ;;  %s674_s17 = sphi %s710_s17, %s14_s17   ;;  %s670_s16 = sphi %s708_s16, %s772_s16   ;;  %s666_s15 = sphi %s706_s15, %s771_s15  }
   0x3   : > { %p35_p1 = scmp.ge.s32.totalorder %s33_s18, 2  ;;  %p224_p2 = scmp.lt.s32.totalorder %s674_s17, 3 }
   0x5   : > { %s774_s18 = smov (%p35_p1, %s33_s18), 0  ;;  %p225_p3 = pnand %p588_p0, %p224_p2 }
   0x6   : > { %p276_p4 = scmp.lt.s32.totalorder (!%p225_p3), %s666_s15, 1  ;;  %s677_s23 = smov (!%p225_p3), 127  }
   0x7   : > { %228 = sbr.rel (%p225_p3) target bundleno = 351 (0x15f), region = 36  ;;  %s678_s24 = smov (!%p225_p3), 126  }
   0xc   : > { %v676_v0 = vmov 0.0   ;;  %s776_s15 = smov (!%p276_p4, %s666_s15), 1  ;;  %vm679_vm0 = vmmov 0   ;;  %v680_v3 = vmov 0   ;;  %v402_v4 = vld [vmem:[%s768_s2 + $0x8] sm:$0xff]  ;;  %v401_v5 = vld [vmem:[%s768_s2] sm:$0xff] }
   0xd   : > { %606 = vmatprep.subr.bf16.mxu0 %v676_v0  ;;  %s600_s19 = sshll.u32 %s776_s15, 4  ;;  %612 = vmatprep.mubr.msk.bf16.mxu0 %vm679_vm0, %v676_v0  ;;  %v415_v6 = vld [vmem:[%s769_s3] sm:$0xff]  ;;  %v416_v7 = vld [vmem:[%s769_s3 + $0x8] sm:$0xff]  ;;  %vm346_vm1 = vcmask 1031168   ;;  %vm339_vm2 = vcmask 1039360   ;;  %vm356_vm3 = vcmask 392192  }
   0xe   : > { %s732_s22 = scalar_lea.vmem %s766_s0, %s600_s19  ;;  %646 = vset.pattern.permute.xlu1 %v680_v3  ;;  %645 = vset.pattern.permute.xlu0 %v680_v3  ;;  %v651_v15 = vld [vmem:[%s767_s1] sm:$0xff]   ;;  %s314_s11 = scalar_lea.vmem %s770_s4, %s600_s19 }
   0xf   : > { %v647_v1 = vld [vmem:[%s732_s22] ss:$8 sps:$4 sm:$0xff]   ;;  %v649_v2 = vld [vmem:[%s732_s22 + $0x4] ss:$8 sps:$4 sm:$0xff]  }
  0x10   : > { %335 = vrot.lane.b32.xlu1 %v647_v1, %s677_s23  ;;  %342 = vrot.lane.b32.xlu0 %v647_v1, %s678_s24  ;;  %v650_v14 = vld [vmem:[%s732_s22] ss:$8 sps:$4 sm:$0xff]  }
  0x14   : > { %337 = vrot.lane.b32.xlu1 %v649_v2, %s677_s23  ;;  %344 = vrot.lane.b32.xlu0 %v649_v2, %s678_s24 }
  0x18   : > { %410 = vperm.xlu1 %646, %v402_v4   ;;  %405 = vperm.xlu0 %645, %v401_v5  }
  0x1c   : > { %419 = vperm.xlu1 %646, %v415_v6   ;;  %424 = vperm.xlu0 %645, %v416_v7  }
  0x82   : > { %v336_v8 = vpop.permute.xlu1 %335  ;;  %v343_v9 = vpop.permute.xlu0 %342 }
  0x86   : > { %v345_v10 = vpop.permute.xlu0 %344  ;;  %v338_v12 = vpop.permute.xlu1 %337 }
  0x87   : > { %v347_v11 = vsel %vm346_vm1, %v343_v9, %v345_v10  ;;  %v340_v13 = vsel %vm339_vm2, %v336_v8, %v338_v12 }
  0x88   : > { %607 = vmatpush3.bf16.msra.mxu0 %v347_v11 }
  0x89   : > { %608 = vmatprep.subr.bf16.mxu0 %v676_v0 }
  0x8c   : > { %609 = vmatpush3.bf16.msra.mxu0 %v340_v13 }
  0x8d   : > { %610 = vmatprep.subr.bf16.mxu0 %v676_v0 }
  0x90   : > { %611 = vmatpush3.bf16.msra.mxu0 %v650_v14 }
  0x93   : > { %613 = vmatmul.mubr.msk.bf16.vlgmr.msra.gmra.mxu0 %vm356_vm3, %v651_v15  ;;  %v411_v16 = vpop.permute.xlu1 %410  ;;  %v406_v17 = vpop.permute.xlu0 %405 }
  0x97   : > { %v420_v19 = vpop.permute.xlu1 %419  ;;  %v425_v26 = vpop.permute.xlu0 %424 }
 0x153   : > { %v394_v18 = vpop.f32.mrf.mxu0 }
 0x154   : > { %v413_v20 = vmul.f32 %v406_v17, %v394_v18 }
 0x155   : > { %v614_v21 = vpop.f32.mrf.mxu0 }
 0x156   : > { %v427_v22 = vadd.f32 %v420_v19, %v413_v20 }
 0x157   : > { %v397_v23 = vpop.f32.mrf.mxu0 }
 0x158   : > { %v429_v24 = vmax.f32 %v427_v22, 0.0  ;;  %v414_v25 = vmul.f32 %v411_v16, %v397_v23 }
 0x159   : > { %v615_v27 = vpop.f32.mrf.mxu0 }
 0x15a   : > { %431 = vst [vmem:[%s314_s11] sm:$0xff] %v429_v24  ;;  %v428_v28 = vadd.f32 %v425_v26, %v414_v25 }
 0x15c   : > { %v430_v29 = vmax.f32 %v428_v28, 0.0 }
 0x15e   : > { %432 = vst [vmem:[%s314_s11 + $0x8] sm:$0xff] %v430_v29 }
 0x15f PF: > { %s14_s17 = sadd.s32 1, %s674_s17   ;;  %s771_s15 = smov %s670_s16 }
 0x160   : > { %p11_p5 = scmp.ge.s32.totalorder %s14_s17, 4   ;;  %s772_s16 = smov %s774_s18 }
 0x162   :  { %13 = sbr.rel (!%p11_p5) target bundleno = 2 (0x2), region = 75 }

</bundles_post_ra>
